<compile_context>
chip_gen: v7x
topology: tpu7x:2x2x1
jax: 0.10.0
libtpu: 0.0.40
codegen_flags: <defaults>
</compile_context>

<pallas_src>
import math
import jax
import jax.numpy as jnp
from jax.experimental import pallas as pl
from jax.experimental.pallas import tpu as pltpu

_SUBLANE = 8     # sublane width (second-to-last dim alignment for batch tiles)


def _round_up(n, m):
    return ((n + m - 1) // m) * m


# ---------------------------------------------------------------------------
# Parameter construction (mirrors LinEncoder.__init__).
# ---------------------------------------------------------------------------
def init_lin_encoder_params(key, AE_layers, in_dim, out_dim, with_batchnorm,
                            eps=1e-5):
    """Deterministic parameter construction mirroring LinEncoder.__init__."""
    params = []
    current_dim = in_dim
    ae_step_size = (in_dim - out_dim) // AE_layers
    for i in range(AE_layers):
        next_dim = current_dim - ae_step_size
        last = (i == AE_layers - 1)
        key, wk = jax.random.split(key)
        # kaiming_normal_(mode='fan_in', nonlinearity='relu'):
        #   std = sqrt(2 / fan_in), fan_in = current_dim
        std = math.sqrt(2.0 / current_dim)
        w = std * jax.random.normal(wk, (next_dim, current_dim), jnp.float32)
        b = jnp.zeros((next_dim,), jnp.float32)
        # BatchNorm1d defaults: gamma=1, beta=0, running_mean=0, running_var=1
        if (not last) and with_batchnorm:
            gamma = jnp.ones((next_dim,), jnp.float32)
            beta = jnp.zeros((next_dim,), jnp.float32)
            running_mean = jnp.zeros((next_dim,), jnp.float32)
            running_var = jnp.ones((next_dim,), jnp.float32)
            scale = gamma / jnp.sqrt(running_var + eps)
            shift = beta - running_mean * scale
            apply_bn = True
        else:
            scale = jnp.ones((next_dim,), jnp.float32)
            shift = jnp.zeros((next_dim,), jnp.float32)
            apply_bn = False
        params.append(dict(w_t=jnp.transpose(w), b=b, scale=scale, shift=shift,
                           apply_bn=apply_bn, apply_act=not last))
        print('enc: ' + str(current_dim) + ' -> ' + str(next_dim))
        current_dim = next_dim
    return params


def fold_params(params, compute_dtype=jnp.bfloat16):
    """Fold bias + eval-mode BN into (W_fold, shift_fold).

    W_fold is cast to `compute_dtype` (MXU operand); shift stays f32 (bias add
    and ReLU run on the VPU in f32 — v5e has no bf16 VPU).  No HBM-side
    feature padding: shapes stay (d_in, d_out) / (1, d_out).
    """
    folded = []
    for p in params:
        w_t = p['w_t']          # (d_in, d_out) f32
        b = p['b']
        if p['apply_bn']:
            # (xW^T + b)*scale + shift == x (W^T*scale) + (b*scale + shift)
            w_f = w_t * p['scale'][None, :]
            s_f = b * p['scale'] + p['shift']
        else:
            w_f = w_t
            s_f = b
        folded.append((w_f.astype(compute_dtype), s_f[None, :].astype(jnp.float32)))
    return folded


# ---------------------------------------------------------------------------
# Fused kernel: all layers in one pallas_call, batch-gridded.
# ---------------------------------------------------------------------------
def _make_fused_kernel(n_layers):
    def kernel(x_ref, *refs):
        o_ref = refs[-1]
        param_refs = refs[:-1]
        h = x_ref[...]                                    # (tb, in_dim) compute dtype
        for li in range(n_layers):
            w = param_refs[2 * li][...]                   # (d_in, d_out) compute dtype
            s = param_refs[2 * li + 1][...]               # (1, d_out)   f32
            # MXU matmul, f32 accumulation; bias/ReLU in f32 on the VPU.
            y = jnp.dot(h, w, preferred_element_type=jnp.float32) + s
            if li < n_layers - 1:
                y = jnp.maximum(y, 0.0)                   # ReLU on hidden layers
                h = y.astype(w.dtype)                     # back to matmul dtype
            else:
                h = y
        o_ref[...] = h.astype(o_ref.dtype)
    return kernel


def lin_encoder_forward(x, params, *, block_b=1024, compute_dtype=jnp.bfloat16,
                        out_dtype=None):
    """Forward pass: single fused Pallas kernel over a batch grid (eval mode)."""
    n_layers = len(params)
    folded = fold_params(params, compute_dtype)
    in_dim = params[0]['w_t'].shape[0]
    out_dim = params[-1]['w_t'].shape[1]
    assert x.shape[1] == in_dim

    if out_dtype is None:
        out_dtype = x.dtype

    B = x.shape[0]
    B8 = _round_up(B, _SUBLANE)
    tb = _round_up(min(block_b, B8), _SUBLANE)
    # v7x megacore: if the whole batch would be one grid step but is large
    # enough to split, halve the tile so the "parallel" axis has >=2 steps and
    # both TensorCores get work (no-op on single-TC v5e/v6e).
    if B8 >= 2 * _SUBLANE and B8 <= tb:
        tb = _round_up((B8 + 1) // 2, _SUBLANE)
    B_pad = _round_up(B8, tb)

    # Cast to the matmul dtype only if needed (callers should pass x already in
    # compute_dtype to avoid this extra HBM pass), and pad only the batch
    # remainder — no feature-dim padding, no full-array zeros().set() copy.
    x_in = x if x.dtype == compute_dtype else x.astype(compute_dtype)
    if B_pad != B:
        x_in = jnp.pad(x_in, ((0, B_pad - B), (0, 0)))

    grid = (B_pad // tb,)

    # x / out: feature dims are full-extent (exempt from 128-lane rule).
    in_specs = [pl.BlockSpec((tb, in_dim), lambda i: (i, 0))]
    flat_inputs = [x_in]
    for (w_f, s_f) in folded:
        di, do = w_f.shape
        # Constant (0,0) block index -> fetched once, VMEM-resident across steps.
        in_specs.append(pl.BlockSpec((di, do), lambda i: (0, 0)))
        in_specs.append(pl.BlockSpec((1, do), lambda i: (0, 0)))
        flat_inputs.append(w_f)
        flat_inputs.append(s_f)

    out_spec = pl.BlockSpec((tb, out_dim), lambda i: (i, 0))

    y = pl.pallas_call(
        _make_fused_kernel(n_layers),
        out_shape=jax.ShapeDtypeStruct((B_pad, out_dim), out_dtype),
        grid=grid,
        in_specs=in_specs,
        out_specs=out_spec,
        compiler_params=pltpu.CompilerParams(
            # batch axis is independent -> megacore-shardable on v7x
            dimension_semantics=("parallel",),
            # tiles are tiny (<1 MiB even at tb=4096 bf16); default scoped VMEM
            # limits (16/32 MiB) are ample on every generation.
        ),
    )(*flat_inputs)

    return y[:B] if B_pad != B else y


# ---------------------------------------------------------------------------
# Pure-JAX f32 reference for correctness checking (raw, un-folded params).
# ---------------------------------------------------------------------------
def lin_encoder_reference(x, params):
    x = x.astype(jnp.float32)
    for p in params:
        y = x @ p['w_t'] + p['b']
        if p['apply_bn']:
            y = y * p['scale'] + p['shift']
        if p['apply_act']:
            y = jnp.maximum(y, 0.0)
        x = y
    return x


if __name__ == "__main__":
    # Small config consistent with the module: AE_layers=2, 32 -> 24 -> 16
    AE_layers = 2
    in_dim, out_dim = 32, 16
    with_batchnorm = True

    key = jax.random.PRNGKey(0)
    key, xk1, xk2 = jax.random.split(key, 3)
    params = init_lin_encoder_params(key, AE_layers, in_dim, out_dim,
                                     with_batchnorm)

    # Test 1: tiny batch, f32 end-to-end (single grid step) -- tight tolerance.
    x1 = jax.random.normal(xk1, (8, in_dim), jnp.float32)
    out1 = jax.block_until_ready(
        lin_encoder_forward(x1, params, compute_dtype=jnp.float32))
    ref1 = lin_encoder_reference(x1, params)
    assert out1.shape == ref1.shape == (8, out_dim)
    assert jnp.allclose(out1, ref1, atol=2e-4, rtol=2e-4), "mismatch (f32, batch=8)"

    # Test 2: larger non-aligned batch, bf16 I/O + bf16 MXU operands (default),
    # multiple grid steps + batch-remainder padding; compare vs f32 reference.
    x2 = jax.random.normal(xk2, (300, in_dim), jnp.float32).astype(jnp.bfloat16)
    out2 = jax.block_until_ready(
        lin_encoder_forward(x2, params, block_b=128, out_dtype=jnp.float32))
    ref2 = lin_encoder_reference(x2, params)
    assert out2.shape == ref2.shape == (300, out_dim)
    assert jnp.allclose(out2, ref2, atol=5e-2, rtol=5e-2), "mismatch (bf16, batch=300)"

    # Test 3: batch big enough that the single-tile case is split into >=2
    # "parallel" grid steps (v7x megacore path); default block_b.
    x3 = jax.random.normal(xk1, (512, in_dim), jnp.float32).astype(jnp.bfloat16)
    out3 = jax.block_until_ready(
        lin_encoder_forward(x3, params, out_dtype=jnp.float32))
    ref3 = lin_encoder_reference(x3, params)
    assert out3.shape == ref3.shape == (512, out_dim)
    assert jnp.allclose(out3, ref3, atol=5e-2, rtol=5e-2), "mismatch (bf16, batch=512)"

    print("KERNEL_OK")
</pallas_src>

<mosaic_0001>
module attributes {stable_mosaic.version = 11 : i64} {
  func.func @kernel(%arg0: i32, %arg1: memref<8x32xf32, #tpu.memory_space<vmem>>, %arg2: memref<32x24xf32, #tpu.memory_space<vmem>>, %arg3: memref<1x24xf32, #tpu.memory_space<vmem>>, %arg4: memref<24x16xf32, #tpu.memory_space<vmem>>, %arg5: memref<1x16xf32, #tpu.memory_space<vmem>>, %arg6: memref<8x16xf32, #tpu.memory_space<vmem>>) attributes {dimension_semantics = [#tpu.dimension_semantics<parallel>], iteration_bounds = array<i64: 1>, scalar_prefetch = 0 : i64, scratch_operands = 0 : i64, tpu.core_type = #tpu.core_type<tc>, window_params = [{transform_indices = @transform_0, window_bounds = array<i64: 8, 32>}, {pipeline_mode = #tpu.pipeline_mode<synchronous>, transform_indices = @transform_1, window_bounds = array<i64: 32, 24>}, {pipeline_mode = #tpu.pipeline_mode<synchronous>, transform_indices = @transform_2, window_bounds = array<i64: 1, 24>}, {pipeline_mode = #tpu.pipeline_mode<synchronous>, transform_indices = @transform_3, window_bounds = array<i64: 24, 16>}, {pipeline_mode = #tpu.pipeline_mode<synchronous>, transform_indices = @transform_4, window_bounds = array<i64: 1, 16>}, {transform_indices = @transform_5, window_bounds = array<i64: 8, 16>}]} {
    %c0 = arith.constant 0 : index
    %c0_0 = arith.constant 0 : index
    %0 = vector.load %arg1[%c0, %c0_0] : memref<8x32xf32, #tpu.memory_space<vmem>>, vector<8x32xf32>
    %c0_1 = arith.constant 0 : index
    %c0_2 = arith.constant 0 : index
    %1 = vector.load %arg2[%c0_1, %c0_2] : memref<32x24xf32, #tpu.memory_space<vmem>>, vector<32x24xf32>
    %c0_3 = arith.constant 0 : index
    %c0_4 = arith.constant 0 : index
    %2 = vector.load %arg3[%c0_3, %c0_4] : memref<1x24xf32, #tpu.memory_space<vmem>>, vector<1x24xf32>
    %cst = arith.constant dense<0.000000e+00> : vector<8x24xf32>
    %3 = tpu.matmul %0, %1, %cst {dimension_numbers = #tpu.dot_dimension_numbers<[1], [0], [0], [1], [0, 0, 1, 1], [], []>} : vector<8x32xf32>, vector<32x24xf32>, vector<8x24xf32> -> vector<8x24xf32>
    %4 = vector.broadcast %2 : vector<1x24xf32> to vector<8x24xf32>
    %5 = arith.addf %3, %4 : vector<8x24xf32>
    %cst_5 = arith.constant 0.000000e+00 : f32
    %6 = vector.broadcast %cst_5 : f32 to vector<8x24xf32>
    %7 = arith.maximumf %5, %6 : vector<8x24xf32>
    %c0_6 = arith.constant 0 : index
    %c0_7 = arith.constant 0 : index
    %8 = vector.load %arg4[%c0_6, %c0_7] : memref<24x16xf32, #tpu.memory_space<vmem>>, vector<24x16xf32>
    %c0_8 = arith.constant 0 : index
    %c0_9 = arith.constant 0 : index
    %9 = vector.load %arg5[%c0_8, %c0_9] : memref<1x16xf32, #tpu.memory_space<vmem>>, vector<1x16xf32>
    %cst_10 = arith.constant dense<0.000000e+00> : vector<8x16xf32>
    %10 = tpu.matmul %7, %8, %cst_10 {dimension_numbers = #tpu.dot_dimension_numbers<[1], [0], [0], [1], [0, 0, 1, 1], [], []>} : vector<8x24xf32>, vector<24x16xf32>, vector<8x16xf32> -> vector<8x16xf32>
    %11 = vector.broadcast %9 : vector<1x16xf32> to vector<8x16xf32>
    %12 = arith.addf %10, %11 : vector<8x16xf32>
    %c0_11 = arith.constant 0 : index
    %c0_12 = arith.constant 0 : index
    %13 = vector.load %arg6[%c0_11, %c0_12] : memref<8x16xf32, #tpu.memory_space<vmem>>, vector<8x16xf32>
    tpu.vector_store %arg6[%c0_11, %c0_12], %12 {strides = array<i32>} : memref<8x16xf32, #tpu.memory_space<vmem>>, vector<8x16xf32>,
    return
  }
  func.func @transform_0(%arg0: i32) -> (i32, i32) {
    %c0_i32 = arith.constant 0 : i32
    %c0_i32_0 = arith.constant 0 : i32
    return %arg0, %c0_i32 : i32, i32
  }
  func.func @transform_1(%arg0: i32) -> (i32, i32) {
    %c0_i32 = arith.constant 0 : i32
    %c0_i32_0 = arith.constant 0 : i32
    %c0_i32_1 = arith.constant 0 : i32
    return %c0_i32, %c0_i32_0 : i32, i32
  }
  func.func @transform_2(%arg0: i32) -> (i32, i32) {
    %c0_i32 = arith.constant 0 : i32
    %c0_i32_0 = arith.constant 0 : i32
    %c0_i32_1 = arith.constant 0 : i32
    return %c0_i32, %c0_i32_0 : i32, i32
  }
  func.func @transform_3(%arg0: i32) -> (i32, i32) {
    %c0_i32 = arith.constant 0 : i32
    %c0_i32_0 = arith.constant 0 : i32
    %c0_i32_1 = arith.constant 0 : i32
    return %c0_i32, %c0_i32_0 : i32, i32
  }
  func.func @transform_4(%arg0: i32) -> (i32, i32) {
    %c0_i32 = arith.constant 0 : i32
    %c0_i32_0 = arith.constant 0 : i32
    %c0_i32_1 = arith.constant 0 : i32
    return %c0_i32, %c0_i32_0 : i32, i32
  }
  func.func @transform_5(%arg0: i32) -> (i32, i32) {
    %c0_i32 = arith.constant 0 : i32
    %c0_i32_0 = arith.constant 0 : i32
    return %arg0, %c0_i32 : i32, i32
  }
}

</mosaic_0001>

<bundles_post_ra>
// kernel: tpu_custom_call.1
= control target key start
LH: loop header
LB: loop body
LE: loop exit
PB: predicated region body
PF: predicated region fallthrough
CT: control target
= control target key end

     0   :  { %v278_v3 = vmov 0.0|0.0   ;;  %vm279_vm0 = vmmov 0   ;;  %v280_v6 = vmov 0.0   ;;  %s354_s0 = inlined_call_operand.vmem [shape: f32[8,32], index: 0, kind: input, shape index: {}]   ;;  %s355_s1 = inlined_call_operand.vmem [shape: f32[32,24], index: 1, kind: input, shape index: {}]   ;;  %s356_s2 = inlined_call_operand.vmem [shape: f32[1,24], index: 2, kind: input, shape index: {}]   ;;  %s357_s3 = inlined_call_operand.vmem [shape: f32[24,16], index: 3, kind: input, shape index: {}]   ;;  %s358_s4 = inlined_call_operand.vmem [shape: f32[1,16], index: 4, kind: input, shape index: {}]   ;;  %s359_s5 = inlined_call_operand.hbm [shape: f32[8,16], index: 5, kind: output, shape index: {}]  }
   0x1   :  { %v22_v0 = vld [vmem:[%s355_s1] sm:$0xff]  ;;  %v23_v1 = vld [vmem:[%s355_s1 + $0x8] sm:$0xff]  ;;  %v24_v2 = vld [vmem:[%s355_s1 + $0x10] sm:$0xff]  ;;  %241 = vmatprep.subr.bf16.mxu0 %v278_v3  ;;  %229 = vmatprep.mubr.msk.f32.mxu0 %vm279_vm0, %v280_v6 }
   0x2   :  { %v242_v4 = vpack.c.bf16 %v23_v1, %v22_v0  ;;  %v25_v5 = vld [vmem:[%s355_s1 + $0x18] sm:$0xff]  ;;  %247 = vmatprep.subr.bf16.mxu1 %v278_v3  ;;  %238 = vmatprep.mubr.msk.f32.mxu1 %vm279_vm0, %v280_v6 }
   0x3   :  { %10 = vsyncpa [#allocation3], 0  ;;  %v245_v7 = vpack.c.bf16 %v25_v5, %v24_v2  ;;  %v21_v8 = vld [vmem:[%s354_s0] sm:$0xff]  ;;  %vm33_vm1 = vcmask 261120   ;;  %v109_v10 = vld [vmem:[%s357_s3 + $0x8] sm:$0xff]  ;;  %vm118_vm2 = vcmask 195584  }
   0x4   :  { %243 = vmatpush3.bf16.msra.mxu0 %v242_v4  ;;  %v108_v9 = vld [vmem:[%s357_s3] sm:$0xff]  ;;  %v110_v12 = vld [vmem:[%s357_s3 + $0x10] sm:$0xff]  ;;  %s281_s11 = smov [#allocation2]   ;;  %vm192_vm3 = vcmask 130048  }
   0x5   :  { %244 = vmatprep.subr.bf16.mxu0 %v278_v3  ;;  %v248_v11 = vpack.c.bf16 %v109_v10, %v108_v9  ;;  %v208_v13 = vld [vmem:[%s356_s2] ss:$0 sm:$0xff]  ;;  %s200_s12 = sshll.u32 %s281_s11, 4  ;;  %s201_s12 = int_to_ptr.vmem [resolvable:$true] %s200_s12 }
   0x6   :  { %v210_v18 = vld [vmem:[%s358_s4] ss:$0 sm:$0xff]  ;;  %s254_s3 = scalar_lea.vmem %s201_s12, 128  ;;  %p259_p1 = scmp.lt.s32.totalorder %s201_s12, %s201_s12 }
   0x7   :  { %249 = vmatpush3.bf16.msra.mxu1 %v248_v11  ;;  %p255_p0 = scmp.ne.s32.totalorder %s201_s12, %s254_s3  ;;  %p260_p2 = scmp.lt.s32.totalorder %s254_s3, %s254_s3 }
   0x8   :  { %246 = vmatpush3.bf16.msra.mxu0 %v245_v7  ;;  %236 = vmatprep.subr.mxu1 %v280_v6 }
   0x9   :  { %p261_p3 = por %p260_p2, %p259_p1 }
   0xb   :  { %230 = vmatmul.mubr.msk.f32.vlgmr.msra.gmra.mrb[0].mxu0 %vm33_vm1, %v21_v8  ;;  %237 = vmatpush3.msra.mxu1 %v110_v12  ;;  %p262_p4 = pnand %p261_p3, %p255_p0 }
  0xde   :  { %v103_v14 = vpop.f32.mrb[0].mxu0 }
  0xdf   :  { %v104_v15 = vadd.f32 %v208_v13, %v103_v14  ;;  %v231_v16 = vpop.f32.mrb[1].mxu0 }
  0xe1   :  { %v107_v17 = vmax.f32 %v104_v15, 0.0 }
  0xe3   :  { %239 = vmatmul.mubr.msk.f32.vlgmr.msra.gmra.mrb[0].mxu1 %vm118_vm2, %v107_v17 }
 0x1b6   :  { %v188_v19 = vpop.f32.mrb[0].mxu1 }
 0x1b7   :  { %v189_v20 = vadd.f32 %v210_v18, %v188_v19  ;;  %v240_v21 = vpop.f32.mrb[1].mxu1 }
 0x1b9   :  { %193 = vst.msk [vmem:[#allocation2] sm:$0xff] %vm192_vm3, %v189_v20 }
 0x1ba   :  { %265 = shalt.err (!%p262_p4)
}
 0x1bb   :  { %s266_s14 = scalar_lea.hbm %s359_s5, 128 }
 0x1bc   :  { %p267_p5 = scmp.ne.s32.totalorder %s359_s5, %s266_s14  ;;  %p270_p6 = scmp.lt.u32.totalorder %s266_s14, %s359_s5 }
 0x1be   :  { %p272_p7 = pnand %p270_p6, %p267_p5 }
 0x1c0   :  { %275 = shalt.err (!%p272_p7)
}
 0x1c1   :  { %203 = dma.vmem_to_hbm [thread:$0]  %s201_s12, 128, %s359_s5, [#allocation3]  }
 0x1c2   :  { %276 = dma.done.wait [#allocation3], 128  }
 0x1c3   :  { %277 = vsyncadd [#allocation3], 4294967168 }
 0x1c4   :  { %207 = vsyncpa [#allocation3], 1 }

</bundles_post_ra>
